<compile_context>
chip_gen: v7x
topology: tpu7x:2x2x1
jax: 0.10.0
libtpu: 0.0.40
codegen_flags: <defaults>
</compile_context>

<pallas_src>
import math

import numpy as np
import jax
import jax.numpy as jnp
from jax import lax
from jax.experimental import pallas as pl
from jax.experimental.pallas import tpu as pltpu

_LANE = 128
_SUBLANE = 8
# ~2 MiB (f32) per block => ~8 MiB with double-buffered in+out, safe on v5e/v6e/v7x.
_BLOCK_BYTES_TARGET = 2 * 1024 * 1024
_MAX_TILE_ROWS = 4096
_MAX_PACKED_WIDTH = 512  # cap packed lane width so the segment matrix stays <= 1 MiB


def _squash_rows_kernel(x_ref, o_ref):
    # Fallback layout: (TILE_R, D), reduction over the lane axis.
    # NOTE: upcast to f32 only inside the kernel (block budget already assumes 4 B/elem).
    x = x_ref[...].astype(jnp.float32)
    s = jnp.sum(x * x, axis=-1, keepdims=True)                     # ||x||^2
    scale = jnp.sqrt(s) * pl.reciprocal(1.0 + s, approx=False)     # sqrt/rcp -> EUP
    o_ref[...] = (x * scale).astype(o_ref.dtype)


def _squash_packed_kernel(x_ref, seg_ref, o_ref):
    # Lane-dense layout: (TILE_R, W) with k = W // D capsules packed per row.
    # seg_ref is a (W, W) block-diagonal 0/1 matrix: (x*x) @ seg gives, for every
    # element, the sum of squares over its own capsule (a lane-dense segmented
    # reduction on the otherwise idle MXU).  HIGHEST precision keeps f32 accuracy.
    x = x_ref[...].astype(jnp.float32)
    sq = x * x
    s = jnp.dot(sq, seg_ref[...],
                preferred_element_type=jnp.float32,
                precision=lax.Precision.HIGHEST)                   # per-element ||x||^2
    scale = jnp.sqrt(s) * pl.reciprocal(1.0 + s, approx=False)
    o_ref[...] = (x * scale).astype(o_ref.dtype)


def _pick_tile_rows(total_rows, lane_width, max_tile_rows=None):
    """Largest row tile (multiple of 8) with ~_BLOCK_BYTES_TARGET f32 bytes/block."""
    t = max(_SUBLANE, _BLOCK_BYTES_TARGET // (lane_width * 4))
    t = (t // _SUBLANE) * _SUBLANE
    t = min(t, _MAX_TILE_ROWS)
    if max_tile_rows is not None:
        t = min(t, max(_SUBLANE, (max_tile_rows // _SUBLANE) * _SUBLANE))
    if total_rows <= t:
        return total_rows, 1              # single block (block dim == full dim is legal)
    return t, (total_rows + t - 1) // t   # Pallas masks the partial tail block


def squash_pallas(x: jax.Array, kind: str = "identity", p: int = 2, dim: int = -1,
                  *, max_tile_rows: int | None = None) -> jax.Array:
    """Pallas equivalent of Squash.forward. Supports p=2, dim=-1 (module defaults)."""
    if kind not in ("dr", "sa"):
        return x  # identity pass-through
    assert p == 2, "only p=2 (L2 norm) implemented"
    assert dim in (-1, x.ndim - 1), "only dim=-1 implemented"
    if x.size == 0:
        return x

    orig_shape = x.shape
    D = orig_shape[-1]
    rows = int(np.prod(orig_shape[:-1])) if len(orig_shape) > 1 else 1

    compiler_params = pltpu.CompilerParams(dimension_semantics=("parallel",))

    # ---- lane-dense packed path (common capsule dims: D < 128 dividing into 128) ----
    if 0 < D < _LANE:
        k = math.lcm(D, _LANE) // D
        W = k * D                              # multiple of 128 -> unmasked loads/stores
        if W <= _MAX_PACKED_WIDTH and rows % k == 0:
            R = rows // k
            x2d = x.reshape(R, W)              # pure view reshape, no HBM copy
            seg_idx = np.arange(W) // D
            seg = jnp.asarray((seg_idx[:, None] == seg_idx[None, :]).astype(np.float32))
            tile_r, n_blocks = _pick_tile_rows(R, W, max_tile_rows)
            out2d = pl.pallas_call(
                _squash_packed_kernel,
                out_shape=jax.ShapeDtypeStruct((R, W), x.dtype),
                grid_spec=pltpu.PrefetchScalarGridSpec(
                    num_scalar_prefetch=0,
                    grid=(n_blocks,),
                    in_specs=[
                        pl.BlockSpec((tile_r, W), lambda i: (i, 0)),
                        # constant block index -> fetched once, stays resident in VMEM
                        pl.BlockSpec((W, W), lambda i: (0, 0)),
                    ],
                    out_specs=pl.BlockSpec((tile_r, W), lambda i: (i, 0)),
                ),
                compiler_params=compiler_params,
            )(x2d, seg)
            return out2d.reshape(orig_shape)

    # ---- fallback: natural (rows, D) layout with large row tiles ----
    x2d = x.reshape(rows, D)
    tile_r, n_blocks = _pick_tile_rows(rows, D, max_tile_rows)
    out2d = pl.pallas_call(
        _squash_rows_kernel,
        out_shape=jax.ShapeDtypeStruct((rows, D), x.dtype),
        grid_spec=pltpu.PrefetchScalarGridSpec(
            num_scalar_prefetch=0,
            grid=(n_blocks,),
            in_specs=[pl.BlockSpec((tile_r, D), lambda i: (i, 0))],
            out_specs=pl.BlockSpec((tile_r, D), lambda i: (i, 0)),
        ),
        compiler_params=compiler_params,
    )(x2d)
    return out2d.reshape(orig_shape)


def _squash_ref(x, kind):
    if kind not in ("dr", "sa"):
        return x
    xf = x.astype(jnp.float32)
    norm = jnp.sqrt(jnp.sum(xf * xf, axis=-1, keepdims=True))
    return (xf * norm / (1.0 + norm * norm)).astype(x.dtype)


if __name__ == "__main__":
    key = jax.random.PRNGKey(0)

    # capsule-style input: batch=2, num_capsules=8, capsule_dim=32 (packed lane-dense path)
    x = jax.random.normal(key, (2, 8, 32), dtype=jnp.float32)

    out_dr = jax.block_until_ready(squash_pallas(x, kind="dr"))
    ref_dr = _squash_ref(x, "dr")
    assert out_dr.shape == x.shape and out_dr.dtype == x.dtype
    assert jnp.allclose(out_dr, ref_dr, atol=1e-5, rtol=1e-5)

    # kind='sa' uses the same math
    out_sa = jax.block_until_ready(squash_pallas(x, kind="sa"))
    assert jnp.allclose(out_sa, ref_dr, atol=1e-5, rtol=1e-5)

    # kind='identity' pass-through
    out_id = jax.block_until_ready(squash_pallas(x, kind="identity"))
    assert jnp.allclose(out_id, x)

    # packed path with a multi-block grid and a partial (masked) tail block
    x2 = jax.random.normal(jax.random.PRNGKey(1), (2, 26, 32), dtype=jnp.float32)
    out2 = jax.block_until_ready(squash_pallas(x2, kind="dr", max_tile_rows=8))
    assert jnp.allclose(out2, _squash_ref(x2, "dr"), atol=1e-5, rtol=1e-5)

    # fallback (non-packed) path: D >= 128, single block
    x3 = jax.random.normal(jax.random.PRNGKey(2), (3, 5, 160), dtype=jnp.float32)
    out3 = jax.block_until_ready(squash_pallas(x3, kind="dr"))
    assert jnp.allclose(out3, _squash_ref(x3, "dr"), atol=1e-5, rtol=1e-5)

    # fallback path with multi-block grid + partial tail block
    x4 = jax.random.normal(jax.random.PRNGKey(4), (50, 200), dtype=jnp.float32)
    out4 = jax.block_until_ready(squash_pallas(x4, kind="dr", max_tile_rows=8))
    assert jnp.allclose(out4, _squash_ref(x4, "dr"), atol=1e-5, rtol=1e-5)

    # bf16 input through the packed path (upcast happens only inside the kernel)
    xb = jax.random.normal(jax.random.PRNGKey(3), (2, 8, 16), dtype=jnp.bfloat16)
    outb = jax.block_until_ready(squash_pallas(xb, kind="dr"))
    assert outb.dtype == jnp.bfloat16
    assert jnp.allclose(outb.astype(jnp.float32),
                        _squash_ref(xb, "dr").astype(jnp.float32),
                        atol=2e-2, rtol=2e-2)

    print("KERNEL_OK")
</pallas_src>

<mosaic_0001>
module attributes {stable_mosaic.version = 11 : i64} {
  func.func @_squash_packed_kernel(%arg0: i32, %arg1: memref<4x128xf32, #tpu.memory_space<vmem>>, %arg2: memref<128x128xf32, #tpu.memory_space<vmem>>, %arg3: memref<4x128xf32, #tpu.memory_space<vmem>>) attributes {dimension_semantics = [#tpu.dimension_semantics<parallel>], iteration_bounds = array<i64: 1>, scalar_prefetch = 0 : i64, scratch_operands = 0 : i64, tpu.core_type = #tpu.core_type<tc>, window_params = [{transform_indices = @transform_0, window_bounds = array<i64: 4, 128>}, {pipeline_mode = #tpu.pipeline_mode<synchronous>, transform_indices = @transform_1, window_bounds = array<i64: 128, 128>}, {transform_indices = @transform_2, window_bounds = array<i64: 4, 128>}]} {
    %c0 = arith.constant 0 : index
    %c0_0 = arith.constant 0 : index
    %0 = vector.load %arg1[%c0, %c0_0] : memref<4x128xf32, #tpu.memory_space<vmem>>, vector<4x128xf32>
    %1 = arith.mulf %0, %0 : vector<4x128xf32>
    %c0_1 = arith.constant 0 : index
    %c0_2 = arith.constant 0 : index
    %2 = vector.load %arg2[%c0_1, %c0_2] : memref<128x128xf32, #tpu.memory_space<vmem>>, vector<128x128xf32>
    %cst = arith.constant dense<0.000000e+00> : vector<4x128xf32>
    %3 = tpu.matmul %1, %2, %cst {dimension_numbers = #tpu.dot_dimension_numbers<[1], [0], [0], [1], [0, 0, 1, 1], [], []>, precision = #tpu.contract_precision<fp32>} : vector<4x128xf32>, vector<128x128xf32>, vector<4x128xf32> -> vector<4x128xf32>
    %4 = math.sqrt %3 : vector<4x128xf32>
    %cst_3 = arith.constant 1.000000e+00 : f32
    %5 = vector.broadcast %cst_3 : f32 to vector<4x128xf32>
    %6 = arith.addf %5, %3 : vector<4x128xf32>
    %7 = tpu.reciprocal %6 : vector<4x128xf32> -> vector<4x128xf32>
    %8 = arith.mulf %4, %7 : vector<4x128xf32>
    %9 = arith.mulf %0, %8 : vector<4x128xf32>
    %c0_4 = arith.constant 0 : index
    %c0_5 = arith.constant 0 : index
    %10 = vector.load %arg3[%c0_4, %c0_5] : memref<4x128xf32, #tpu.memory_space<vmem>>, vector<4x128xf32>
    tpu.vector_store %arg3[%c0_4, %c0_5], %9 {strides = array<i32>} : memref<4x128xf32, #tpu.memory_space<vmem>>, vector<4x128xf32>,
    return
  }
  func.func @transform_0(%arg0: i32) -> (i32, i32) {
    %c0_i32 = arith.constant 0 : i32
    %c0_i32_0 = arith.constant 0 : i32
    return %arg0, %c0_i32 : i32, i32
  }
  func.func @transform_1(%arg0: i32) -> (i32, i32) {
    %c0_i32 = arith.constant 0 : i32
    %c0_i32_0 = arith.constant 0 : i32
    %c0_i32_1 = arith.constant 0 : i32
    return %c0_i32, %c0_i32_0 : i32, i32
  }
  func.func @transform_2(%arg0: i32) -> (i32, i32) {
    %c0_i32 = arith.constant 0 : i32
    %c0_i32_0 = arith.constant 0 : i32
    return %arg0, %c0_i32 : i32, i32
  }
}

</mosaic_0001>

<bundles_post_ra>
// kernel: tpu_custom_call.1
= control target key start
LH: loop header
LB: loop body
LE: loop exit
PB: predicated region body
PF: predicated region fallthrough
CT: control target
= control target key end

     0   :  { %7 = vsyncpa [#allocation3], 0  ;;  %s1592_s0 = inlined_call_operand.hbm [shape: f32[4,128], index: 0, kind: input, shape index: {}]   ;;  %s1593_s1 = inlined_call_operand.hbm [shape: f32[128,128], index: 1, kind: input, shape index: {}]   ;;  %s1594_s2 = inlined_call_operand.hbm [shape: f32[4,128], index: 2, kind: output, shape index: {}]  }
   0x1   :  { %8 = vsyncpa [#allocation6], 0 }
   0x2   :  { %9 = vsyncpa [#allocation4], 0  ;;  %s1274_s9 = smov [#allocation2]   ;;  %s1275_s11 = smov [#allocation5]  }
   0x3   :  { %s16_s10 = sshll.u32 %s1274_s9, 4  ;;  %s25_s12 = sshll.u32 %s1275_s11, 4  ;;  %s17_s10 = int_to_ptr.vmem [resolvable:$true] %s16_s10  ;;  %s1297_s12 = int_to_ptr.vmem [resolvable:$true] %s25_s12 }
   0x4   :  { %s1202_s15 = scalar_lea.hbm %s1592_s0, 64 }
   0x5   :  { %p1203_p0 = scmp.ne.s32.totalorder %s1592_s0, %s1202_s15  ;;  %p1206_p1 = scmp.lt.u32.totalorder %s1202_s15, %s1592_s0 }
   0x7   :  { %p1208_p2 = pnand %p1206_p1, %p1203_p0 }
   0x9   :  { %1211 = shalt.err (!%p1208_p2)
}
   0xa   :  { %s1212_s20 = scalar_lea.vmem %s17_s10, 64  ;;  %p1217_p4 = scmp.lt.s32.totalorder %s17_s10, %s17_s10 }
   0xb   :  { %p1213_p3 = scmp.ne.s32.totalorder %s17_s10, %s1212_s20  ;;  %p1218_p5 = scmp.lt.s32.totalorder %s1212_s20, %s1212_s20 }
   0xd   :  { %p1219_p6 = por %p1218_p5, %p1217_p4 }
   0xf   :  { %p1220_p7 = pnand %p1219_p6, %p1213_p3 }
  0x11   :  { %1223 = shalt.err (!%p1220_p7)
}
  0x12   :  { %19 = dma.hbm_to_vmem [thread:$0]  %s1592_s0, 64, %s17_s10, [#allocation3]  }
  0x13   :  { %s1224_s25 = scalar_lea.hbm %s1593_s1, 2048 }
  0x14   :  { %p1225_p8 = scmp.ne.s32.totalorder %s1593_s1, %s1224_s25  ;;  %p1228_p9 = scmp.lt.u32.totalorder %s1224_s25, %s1593_s1 }
  0x16   :  { %p1230_p10 = pnand %p1228_p9, %p1225_p8 }
  0x18   :  { %1233 = shalt.err (!%p1230_p10)
}
  0x19   :  { %s1234_s30 = scalar_lea.vmem %s1297_s12, 2048  ;;  %p1239_p12 = scmp.lt.s32.totalorder %s1297_s12, %s1297_s12 }
  0x1a   :  { %p1235_p11 = scmp.ne.s32.totalorder %s1297_s12, %s1234_s30  ;;  %p1240_p13 = scmp.lt.s32.totalorder %s1234_s30, %s1234_s30 }
  0x1c   :  { %p1241_p0 = por %p1240_p13, %p1239_p12 }
  0x1e   :  { %p1242_p1 = pnand %p1241_p0, %p1235_p11 }
  0x20   :  { %1245 = shalt.err (!%p1242_p1)
}
  0x21   :  { %s1276_s0 = smov 128   ;;  %s1277_s3 = smov 8  }
  0x22   :  { %31 = dma.hbm_to_vmem [thread:$0]  %s1593_s1, 2048, %s1297_s12, [#allocation6], %s1276_s0, %s1276_s0, %s1277_s3  }
  0x23   :  { %1268 = dma.done.wait [#allocation3], 64  }
  0x24   :  { %1269 = vsyncadd [#allocation3], 4294967232 }
  0x25   :  { %1270 = dma.done.wait [#allocation6], 2048  }
  0x26   :  { %1271 = vsyncadd [#allocation6], 4294965248  ;;  %v1278_v0 = vmov 0.0|0.0   ;;  %vm1279_vm0 = vmmov 0   ;;  %v1280_v1 = vmov 0.0   ;;  %v40_v2 = vld [vmem:[#allocation5] sm:$0xff] }
  0x27   :  { %1037 = vmatprep.subr.bf16.mxu1 %v1278_v0  ;;  %1109 = vmatprep.subr.bf16.mxu0 %v1278_v0  ;;  %v41_v3 = vld [vmem:[#allocation5 + $0x8] sm:$0xff]  ;;  %v42_v4 = vld [vmem:[#allocation5 + $0x10] sm:$0xff]  ;;  %v57_v5 = vand.u32 4294901760, %v40_v2  ;;  %v43_v7 = vld [vmem:[#allocation5 + $0x18] sm:$0xff]  ;;  %s1281_s1 = smov [#allocation7]  }
  0x28   :  { %859 = vmatprep.mubr.msk.f32.mxu1 %vm1279_vm0, %v1280_v1  ;;  %964 = vmatprep.mubr.msk.f32.mxu0 %vm1279_vm0, %v1280_v1  ;;  %v60_v6 = vand.u32 4294901760, %v41_v3  ;;  %v63_v8 = vand.u32 4294901760, %v42_v4  ;;  %v66_v9 = vand.u32 4294901760, %v43_v7  ;;  %v44_v10 = vld [vmem:[#allocation5 + $0x20] sm:$0xff]  ;;  %v45_v11 = vld [vmem:[#allocation5 + $0x28] sm:$0xff]  ;;  %v46_v16 = vld [vmem:[#allocation5 + $0x30] sm:$0xff] }
  0x29   :  { %v69_v14 = vand.u32 4294901760, %v44_v10  ;;  %v72_v15 = vand.u32 4294901760, %v45_v11  ;;  %v47_v17 = vld [vmem:[#allocation5 + $0x38] sm:$0xff]  ;;  %v75_v19 = vand.u32 4294901760, %v46_v16  ;;  %v1350_v22 = vld [vmem:[#allocation5 + $0x40] sm:$0xff]  ;;  %v1352_v23 = vld [vmem:[#allocation5 + $0x48] sm:$0xff]  ;;  %v1368_v30 = vsub.f32 %v40_v2, %v57_v5 }
  0x2a   :  { %v1334_v12 = vpack.c.bf16 %v60_v6, %v57_v5  ;;  %v1338_v13 = vpack.c.bf16 %v66_v9, %v63_v8  ;;  %v78_v20 = vand.u32 4294901760, %v47_v17  ;;  %v1346_v21 = vld [vmem:[#allocation2] sm:$0xf]  ;;  %v81_v26 = vand.u32 4294901760, %v1350_v22  ;;  %v1364_v28 = vld [vmem:[#allocation5 + $0x50] sm:$0xff]  ;;  %v1380_v36 = vld [vmem:[#allocation5 + $0x60] sm:$0xff] }
  0x2b   :  { %v1344_v18 = vpack.c.bf16 %v72_v15, %v69_v14  ;;  %v39_v24 = vmul.f32 %v1346_v21, %v1346_v21  ;;  %v84_v27 = vand.u32 4294901760, %v1352_v23  ;;  %v1366_v29 = vld [vmem:[#allocation5 + $0x58] sm:$0xff]  ;;  %v1372_v32 = vsub.f32 %v41_v3, %v60_v6  ;;  %v1384_v37 = vld [vmem:[#allocation5 + $0x68] sm:$0xff]  ;;  %v1403_v44 = vld [vmem:[#allocation5 + $0x70] sm:$0xff]  ;;  %s715_s6 = sshll.u32 %s1281_s1, 4  ;;  %s716_s6 = int_to_ptr.vmem [resolvable:$true] %s715_s6 }
  0x2c   :  { %1039 = vmatpush3.bf16.msra.mxu1 %v1334_v12  ;;  %1111 = vmatpush3.bf16.msra.mxu0 %v1334_v12  ;;  %v1358_v25 = vpack.c.bf16 %v78_v20, %v75_v19  ;;  %v87_v34 = vand.u32 4294901760, %v1364_v28  ;;  %v90_v35 = vand.u32 4294901760, %v1366_v29  ;;  %v1386_v38 = vsub.f32 %v42_v4, %v63_v8  ;;  %v1405_v45 = vld [vmem:[#allocation5 + $0x78] sm:$0xff]  ;;  %s1246_s7 = scalar_lea.vmem %s716_s6, 64  ;;  %p1251_p3 = scmp.lt.s32.totalorder %s716_s6, %s716_s6 }
  0x2d   :  { %1040 = vmatprep.subr.bf16.mxu1 %v1278_v0  ;;  %1112 = vmatprep.subr.bf16.mxu0 %v1278_v0  ;;  %v1370_v31 = vand.u32 4294901760, %v39_v24  ;;  %v1376_v33 = vpack.c.bf16 %v84_v27, %v81_v26  ;;  %v1388_v39 = vsub.f32 %v43_v7, %v66_v9  ;;  %v93_v40 = vand.u32 4294901760, %v1380_v36  ;;  %p1247_p2 = scmp.ne.s32.totalorder %s716_s6, %s1246_s7  ;;  %p1252_p4 = scmp.lt.s32.totalorder %s1246_s7, %s1246_s7 }
  0x2e   :  { %v1400_v42 = vpack.c.bf16 %v90_v35, %v87_v34  ;;  %v96_v43 = vand.u32 4294901760, %v1384_v37  ;;  %v150_v46 = vand.u32 4294901760, %v1368_v30  ;;  %v157_v47 = vand.u32 4294901760, %v1372_v32 }
  0x2f   :  { %v1392_v41 = vsub.f32 %v39_v24, %v1370_v31  ;;  %v1411_v48 = vsub.f32 %v44_v10, %v69_v14  ;;  %v1413_v49 = vsub.f32 %v45_v11, %v72_v15  ;;  %v99_v50 = vand.u32 4294901760, %v1403_v44  ;;  %p1253_p5 = por %p1252_p4, %p1251_p3 }
  0x30   :  { %1042 = vmatpush3.bf16.msra.mxu1 %v1338_v13  ;;  %1114 = vmatpush3.bf16.msra.mxu0 %v1338_v13  ;;  %v102_v51 = vand.u32 4294901760, %v1405_v45  ;;  %v164_v53 = vand.u32 4294901760, %v1386_v38  ;;  %v1425_v54 = vpack.c.bf16 %v96_v43, %v93_v40  ;;  %v151_v55 = vsub.f32 %v1368_v30, %v150_v46 }
  0x31   :  { %1043 = vmatprep.subr.bf16.mxu1 %v1278_v0  ;;  %1115 = vmatprep.subr.bf16.mxu0 %v1278_v0  ;;  %v139_v52 = vand.u32 4294901760, %v1392_v41  ;;  %v158_v56 = vsub.f32 %v1372_v32, %v157_v47  ;;  %v171_v57 = vand.u32 4294901760, %v1388_v39  ;;  %v1432_v58 = vsub.f32 %v46_v16, %v75_v19  ;;  %p1254_p6 = pnand %p1253_p5, %p1247_p2 }
  0x32   :  { %v1434_v59 = vsub.f32 %v47_v17, %v78_v20  ;;  %v165_v61 = vsub.f32 %v1386_v38, %v164_v53  ;;  %v178_v62 = vand.u32 4294901760, %v1411_v48  ;;  %v185_v63 = vand.u32 4294901760, %v1413_v49 }
  0x33   :  { %v140_v60 = vsub.f32 %v1392_v41, %v139_v52  ;;  %v1446_v2 = vpack.c.bf16 %v102_v51, %v99_v50  ;;  %v152_v3 = vand.u32 4294901760, %v151_v55  ;;  %v159_v4 = vand.u32 4294901760, %v158_v56 }
  0x34   :  { %1045 = vmatpush3.bf16.msra.mxu1 %v1344_v18  ;;  %1117 = vmatpush3.bf16.msra.mxu0 %v1344_v18  ;;  %v172_v5 = vsub.f32 %v1388_v39, %v171_v57  ;;  %v1452_v6 = vsub.f32 %v1350_v22, %v81_v26  ;;  %v1455_v7 = vsub.f32 %v1352_v23, %v84_v27  ;;  %v166_v10 = vand.u32 4294901760, %v165_v61 }
  0x35   :  { %1046 = vmatprep.subr.bf16.mxu1 %v1278_v0  ;;  %1118 = vmatprep.subr.bf16.mxu0 %v1278_v0  ;;  %v1134_v8 = vpack.c.bf16 %v157_v47, %v150_v46  ;;  %v141_v9 = vand.u32 4294901760, %v140_v60  ;;  %v179_v11 = vsub.f32 %v1411_v48, %v178_v62  ;;  %v186_v14 = vsub.f32 %v1413_v49, %v185_v63 }
  0x36   :  { %v1062_v15 = vpack.c.bf16 %v159_v4, %v152_v3  ;;  %v173_v16 = vand.u32 4294901760, %v172_v5  ;;  %v192_v17 = vand.u32 4294901760, %v1432_v58  ;;  %v199_v19 = vand.u32 4294901760, %v1434_v59 }
  0x37   :  { %v1468_v20 = vsub.f32 %v1364_v28, %v87_v34  ;;  %v1473_v22 = vsub.f32 %v1366_v29, %v90_v35  ;;  %v1137_v23 = vpack.c.bf16 %v171_v57, %v164_v53  ;;  %v180_v24 = vand.u32 4294901760, %v179_v11 }
  0x38   :  { %1048 = vmatpush3.bf16.msra.mxu1 %v1358_v25  ;;  %1120 = vmatpush3.bf16.msra.mxu0 %v1358_v25  ;;  %v187_v26 = vand.u32 4294901760, %v186_v14  ;;  %v206_v27 = vand.u32 4294901760, %v1452_v6  ;;  %v1065_v46 = vpack.c.bf16 %v173_v16, %v166_v10  ;;  %v193_v47 = vsub.f32 %v1432_v58, %v192_v17 }
  0x39   :  { %1049 = vmatprep.subr.bf16.mxu1 %v1278_v0  ;;  %1121 = vmatprep.subr.bf16.mxu0 %v1278_v0  ;;  %v200_v28 = vsub.f32 %v1434_v59, %v199_v19  ;;  %v213_v34 = vand.u32 4294901760, %v1455_v7  ;;  %v1484_v29 = vsub.f32 %v1380_v36, %v93_v40  ;;  %v1489_v35 = vsub.f32 %v1384_v37, %v96_v43 }
  0x3a   :  { %v1140_v53 = vpack.c.bf16 %v185_v63, %v178_v62  ;;  %v207_v55 = vsub.f32 %v1452_v6, %v206_v27  ;;  %v220_v56 = vand.u32 4294901760, %v1468_v20  ;;  %v194_v36 = vand.u32 4294901760, %v193_v47 }
  0x3b   :  { %v201_v40 = vand.u32 4294901760, %v200_v28  ;;  %v214_v57 = vsub.f32 %v1455_v7, %v213_v34  ;;  %v227_v37 = vand.u32 4294901760, %v1473_v22  ;;  %v1504_v43 = vsub.f32 %v1403_v44, %v99_v50 }
  0x3c   :  { %1051 = vmatpush3.bf16.msra.mxu1 %v1376_v33  ;;  %1123 = vmatpush3.bf16.msra.mxu0 %v1376_v33  ;;  %v1509_v60 = vsub.f32 %v1405_v45, %v102_v51  ;;  %v1143_v61 = vpack.c.bf16 %v199_v19, %v192_v17  ;;  %v208_v62 = vand.u32 4294901760, %v207_v55  ;;  %v221_v63 = vsub.f32 %v1468_v20, %v220_v56 }
  0x3d   :  { %1052 = vmatprep.subr.bf16.mxu1 %v1278_v0  ;;  %1124 = vmatprep.subr.bf16.mxu0 %v1278_v0  ;;  %v234_v3 = vand.u32 4294901760, %v1484_v29  ;;  %v1071_v4 = vpack.c.bf16 %v201_v40, %v194_v36  ;;  %v215_v5 = vand.u32 4294901760, %v214_v57  ;;  %v241_v44 = vand.u32 4294901760, %v1489_v35 }
  0x3e   :  { %v1146_v45 = vpack.c.bf16 %v213_v34, %v206_v27  ;;  %v222_v50 = vand.u32 4294901760, %v221_v63  ;;  %v1149_v16 = vpack.c.bf16 %v227_v37, %v220_v56  ;;  %v1089_v55 = vpack.c.bf16 %v1388_v39, %v1386_v38 }
  0x3f   :  { %v235_v51 = vsub.f32 %v1484_v29, %v234_v3  ;;  %v1074_v10 = vpack.c.bf16 %v215_v5, %v208_v62  ;;  %v242_v14 = vsub.f32 %v1489_v35, %v241_v44 }
  0x40   :  { %1054 = vmatpush3.bf16.msra.mxu1 %v1400_v42  ;;  %1126 = vmatpush3.bf16.msra.mxu0 %v1400_v42 }
  0x41   :  { %1055 = vmatprep.subr.bf16.mxu1 %v1278_v0  ;;  %1127 = vmatprep.subr.bf16.mxu0 %v1278_v0  ;;  %v236_v17 = vand.u32 4294901760, %v235_v51 }
  0x44   :  { %1057 = vmatpush3.bf16.msra.mxu1 %v1425_v54  ;;  %1129 = vmatpush3.bf16.msra.mxu0 %v1425_v54 }
  0x45   :  { %1058 = vmatprep.subr.bf16.mxu1 %v1278_v0  ;;  %1130 = vmatprep.subr.bf16.mxu0 %v1278_v0 }
  0x48   :  { %1060 = vmatpush3.bf16.msra.mxu1 %v1446_v2  ;;  %1132 = vmatpush3.bf16.msra.mxu0 %v1446_v2 }
  0x49   :  { %1061 = vmatprep.subr.bf16.mxu1 %v1278_v0  ;;  %1133 = vmatprep.subr.bf16.mxu0 %v1278_v0 }
  0x4b   :  { %860 = vmatmul.mubr.f32.vlgmr.msra.gmra.mrb[0].mxu1 %v141_v9  ;;  %965 = vmatmul.mubr.f32.vlgmr.msra.gmra.mrb[0].mxu0 %v139_v52  ;;  %v1068_v52 = vpack.c.bf16 %v187_v26, %v180_v24  ;;  %v248_v9 = vand.u32 4294901760, %v1504_v43 }
  0x4c   :  { %1063 = vmatpush3.bf16.msra.mxu1 %v1062_v15  ;;  %1135 = vmatpush3.bf16.msra.mxu0 %v1134_v8  ;;  %v228_v8 = vsub.f32 %v1473_v22, %v227_v37  ;;  %v255_v15 = vand.u32 4294901760, %v1509_v60 }
  0x4d   :  { %1064 = vmatprep.subr.bf16.mxu1 %v1278_v0  ;;  %1136 = vmatprep.subr.bf16.mxu0 %v1278_v0  ;;  %v249_v24 = vsub.f32 %v1504_v43, %v248_v9 }
  0x4e   :  { %894 = vmatprep.mubr.msk.f32.mxu1 %vm1279_vm0, %v1280_v1  ;;  %999 = vmatprep.mubr.msk.f32.mxu0 %vm1279_vm0, %v1280_v1  ;;  %v229_v11 = vand.u32 4294901760, %v228_v8  ;;  %v256_v26 = vsub.f32 %v1509_v60, %v255_v15 }
  0x4f   :  { %v250_v47 = vand.u32 4294901760, %v249_v24 }
  0x50   :  { %1066 = vmatpush3.bf16.msra.mxu1 %v1065_v46  ;;  %1138 = vmatpush3.bf16.msra.mxu0 %v1137_v23  ;;  %v1077_v19 = vpack.c.bf16 %v229_v11, %v222_v50  ;;  %v243_v23 = vand.u32 4294901760, %v242_v14  ;;  %v1152_v46 = vpack.c.bf16 %v241_v44, %v234_v3  ;;  %v257_v28 = vand.u32 4294901760, %v256_v26 }
  0x51   :  { %1067 = vmatprep.subr.bf16.mxu1 %v1278_v0  ;;  %1139 = vmatprep.subr.bf16.mxu0 %v1278_v0 }
  0x52   :  { %v1080_v27 = vpack.c.bf16 %v243_v23, %v236_v17  ;;  %v1083_v34 = vpack.c.bf16 %v257_v28, %v250_v47 }
  0x54   :  { %1069 = vmatpush3.bf16.msra.mxu1 %v1068_v52  ;;  %1141 = vmatpush3.bf16.msra.mxu0 %v1140_v53  ;;  %v1155_v52 = vpack.c.bf16 %v255_v15, %v248_v9  ;;  %v1086_v53 = vpack.c.bf16 %v1372_v32, %v1368_v30  ;;  %v1092_v30 = vpack.c.bf16 %v1413_v49, %v1411_v48 }
  0x55   :  { %1070 = vmatprep.subr.bf16.mxu1 %v1278_v0  ;;  %1142 = vmatprep.subr.bf16.mxu0 %v1278_v0 }
  0x58   :  { %1072 = vmatpush3.bf16.msra.mxu1 %v1071_v4  ;;  %1144 = vmatpush3.bf16.msra.mxu0 %v1143_v61 }
  0x59   :  { %1073 = vmatprep.subr.bf16.mxu1 %v1278_v0  ;;  %1145 = vmatprep.subr.bf16.mxu0 %v1278_v0 }
  0x5c   :  { %1075 = vmatpush3.bf16.msra.mxu1 %v1074_v10  ;;  %1147 = vmatpush3.bf16.msra.mxu0 %v1146_v45 }
  0x5d   :  { %1076 = vmatprep.subr.bf16.mxu1 %v1278_v0  ;;  %1148 = vmatprep.subr.bf16.mxu0 %v1278_v0 }
  0x60   :  { %1078 = vmatpush3.bf16.msra.mxu1 %v1077_v19  ;;  %1150 = vmatpush3.bf16.msra.mxu0 %v1149_v16 }
  0x61   :  { %1079 = vmatprep.subr.bf16.mxu1 %v1278_v0  ;;  %1151 = vmatprep.subr.bf16.mxu0 %v1278_v0 }
  0x64   :  { %1081 = vmatpush3.bf16.msra.mxu1 %v1080_v27  ;;  %1153 = vmatpush3.bf16.msra.mxu0 %v1152_v46 }
  0x65   :  { %1082 = vmatprep.subr.bf16.mxu1 %v1278_v0  ;;  %1154 = vmatprep.subr.bf16.mxu0 %v1278_v0 }
  0x68   :  { %1084 = vmatpush3.bf16.msra.mxu1 %v1083_v34  ;;  %1156 = vmatpush3.bf16.msra.mxu0 %v1155_v52 }
  0x69   :  { %1085 = vmatprep.subr.bf16.mxu1 %v1278_v0  ;;  %1157 = vmatprep.subr.bf16.mxu0 %v1278_v0 }
  0x6b   :  { %895 = vmatmul.mubr.f32.vlgmr.msra.gmra.mrb[0].mxu1 %v1370_v31  ;;  %1000 = vmatmul.mubr.f32.vlgmr.msra.gmra.mrb[0].mxu0 %v1370_v31 }
  0x6c   :  { %1087 = vmatpush3.bf16.msra.mxu1 %v1086_v53  ;;  %1159 = vmatpush3.bf16.msra.mxu0 %v1334_v12  ;;  %v1095_v12 = vpack.c.bf16 %v1434_v59, %v1432_v58 }
  0x6d   :  { %1088 = vmatprep.subr.bf16.mxu1 %v1278_v0  ;;  %1160 = vmatprep.subr.bf16.mxu0 %v1278_v0 }
  0x6e   :  { %929 = vmatprep.mubr.msk.f32.mxu1 %vm1279_vm0, %v1280_v1  ;;  %1034 = vmatprep.mubr.msk.f32.mxu0 %vm1279_vm0, %v1280_v1  ;;  %v1098_v1 = vpack.c.bf16 %v1455_v7, %v1452_v6 }
  0x70   :  { %1090 = vmatpush3.bf16.msra.mxu1 %v1089_v55  ;;  %1162 = vmatpush3.bf16.msra.mxu0 %v1338_v13  ;;  %v1101_v13 = vpack.c.bf16 %v1473_v22, %v1468_v20 }
  0x71   :  { %1091 = vmatprep.subr.bf16.mxu1 %v1278_v0  ;;  %1163 = vmatprep.subr.bf16.mxu0 %v1278_v0 }
  0x74   :  { %1093 = vmatpush3.bf16.msra.mxu1 %v1092_v30  ;;  %1165 = vmatpush3.bf16.msra.mxu0 %v1344_v18  ;;  %v1104_v18 = vpack.c.bf16 %v1489_v35, %v1484_v29 }
  0x75   :  { %1094 = vmatprep.subr.bf16.mxu1 %v1278_v0  ;;  %1166 = vmatprep.subr.bf16.mxu0 %v1278_v0 }
  0x78   :  { %1096 = vmatpush3.bf16.msra.mxu1 %v1095_v12  ;;  %1168 = vmatpush3.bf16.msra.mxu0 %v1358_v25  ;;  %v1107_v25 = vpack.c.bf16 %v1509_v60, %v1504_v43 }
  0x79   :  { %1097 = vmatprep.subr.bf16.mxu1 %v1278_v0  ;;  %1169 = vmatprep.subr.bf16.mxu0 %v1278_v0 }
  0x7c   :  { %1099 = vmatpush3.bf16.msra.mxu1 %v1098_v1  ;;  %1171 = vmatpush3.bf16.msra.mxu0 %v1376_v33 }
  0x7d   :  { %1100 = vmatprep.subr.bf16.mxu1 %v1278_v0  ;;  %1172 = vmatprep.subr.bf16.mxu0 %v1278_v0 }
  0x80   :  { %1102 = vmatpush3.bf16.msra.mxu1 %v1101_v13  ;;  %1174 = vmatpush3.bf16.msra.mxu0 %v1400_v42 }
  0x81   :  { %1103 = vmatprep.subr.bf16.mxu1 %v1278_v0  ;;  %1175 = vmatprep.subr.bf16.mxu0 %v1278_v0 }
  0x84   :  { %1105 = vmatpush3.bf16.msra.mxu1 %v1104_v18  ;;  %1177 = vmatpush3.bf16.msra.mxu0 %v1425_v54 }
  0x85   :  { %1106 = vmatprep.subr.bf16.mxu1 %v1278_v0  ;;  %1178 = vmatprep.subr.bf16.mxu0 %v1278_v0 }
  0x88   :  { %1108 = vmatpush3.bf16.msra.mxu1 %v1107_v25  ;;  %1180 = vmatpush3.bf16.msra.mxu0 %v1446_v2 }
  0x8b   :  { %930 = vmatmul.mubr.f32.vlgmr.msra.gmra.mrb[0].mxu1 %v1392_v41  ;;  %1035 = vmatmul.mubr.f32.vlgmr.msra.gmra.mrb[0].mxu0 %v1370_v31 }
 0x15e   :  { %v398_v32 = vpop.f32.mrb[0].mxu1  ;;  %v693_v33 = vpop.f32.mrb[0].mxu0 }
 0x15f   :  { %v1181_v38 = vadd.f32 %v693_v33, %v398_v32  ;;  %v931_v39 = vpop.f32.mrb[1].mxu1  ;;  %v1036_v42 = vpop.f32.mrb[1].mxu0 }
 0x161   :  { %1198 = vrsqrt.f32 %v1181_v38  ;;  %v704_v48 = vadd.f32 1.0, %v1181_v38  ;;  %vm699_vm1 = vcmp.eq.f32.partialorder %v1181_v38, inf  ;;  %v702_v58 = vand.u32 2147483648, %v1181_v38 }
 0x162   :  { %vm701_vm2 = vcmp.eq.f32.partialorder %v1181_v38, 0.0 }
 0x163   :  { %1200 = vrcp.f32 %v704_v48 }
 0x16b   :  { %v1199_v49 = vpop.eup %1198 }
 0x16c   :  { %v698_v54 = vmul.f32 %v1199_v49, %v1181_v38 }
 0x16d   :  { %v1201_v59 = vpop.eup %1200 }
 0x16e   :  { %v700_v0 = vsel %vm699_vm1, %v1181_v38, %v698_v54 }
 0x16f   :  { %v703_v2 = vsel %vm701_vm2, %v702_v58, %v700_v0 }
 0x170   :  { %v706_v41 = vmul.f32 %v1201_v59, %v703_v2 }
 0x172   :  { %v707_v31 = vmul.f32 %v706_v41, %v1346_v21 }
 0x174   :  { %708 = vst [vmem:[#allocation7] sm:$0xf] %v707_v31 }
 0x175   :  { %1257 = shalt.err (!%p1254_p6)
}
 0x176   :  { %s1258_s10 = scalar_lea.hbm %s1594_s2, 64 }
 0x177   :  { %p1259_p7 = scmp.ne.s32.totalorder %s1594_s2, %s1258_s10  ;;  %p1262_p8 = scmp.lt.u32.totalorder %s1258_s10, %s1594_s2 }
 0x179   :  { %p1264_p9 = pnand %p1262_p8, %p1259_p7 }
 0x17b   :  { %1267 = shalt.err (!%p1264_p9)
}
 0x17c   :  { %718 = dma.vmem_to_hbm [thread:$0]  %s716_s6, 64, %s1594_s2, [#allocation4]  }
 0x17d   :  { %1272 = dma.done.wait [#allocation4], 64  }
 0x17e   :  { %1273 = vsyncadd [#allocation4], 4294967232 }
 0x17f   :  { %722 = vsyncpa [#allocation3], 1 }
 0x180   :  { %723 = vsyncpa [#allocation6], 1 }
 0x181   :  { %724 = vsyncpa [#allocation4], 1 }

</bundles_post_ra>
